<compile_context>
chip_gen: v7x
topology: tpu7x:2x2x1
jax: 0.10.0
libtpu: 0.0.40
codegen_flags: <defaults>
</compile_context>

<pallas_src>
import jax
import jax.numpy as jnp
import numpy as np
from jax.experimental import pallas as pl
from jax.experimental.pallas import tpu as pltpu

LENGTH_INPUT = 300          # input_size (latent) and output_size of the Generator
OUTPUT_SIZE = LENGTH_INPUT

_SUBLANE = 8
_COMPUTE_DTYPE = jnp.bfloat16


def _round_up(n, m):
    return ((n + m - 1) // m) * m


def _generator_kernel(x_ref,
                      w1_ref, b1_ref,
                      w2_ref, b2_ref,
                      w3_ref, b3_ref,
                      w4_ref, b4_ref,
                      o_ref):
    """One batch tile: 4 MXU matmuls (bf16 in, f32 acc) + ReLUs + Tanh."""
    cdt = w1_ref.dtype

    # Cast the streamed f32 tile to bf16 in-kernel (cheap VPU work, overlapped
    # with the MXU) instead of a separate wrapper-side XLA pass.
    x = x_ref[...].astype(cdt)

    h = jnp.dot(x, w1_ref[...],
                preferred_element_type=jnp.float32) + b1_ref[...]
    h = jnp.maximum(h, 0.0)

    h = jnp.dot(h.astype(cdt), w2_ref[...],
                preferred_element_type=jnp.float32) + b2_ref[...]
    h = jnp.maximum(h, 0.0)

    h = jnp.dot(h.astype(cdt), w3_ref[...],
                preferred_element_type=jnp.float32) + b3_ref[...]
    h = jnp.maximum(h, 0.0)

    h = jnp.dot(h.astype(cdt), w4_ref[...],
                preferred_element_type=jnp.float32) + b4_ref[...]

    # Tanh lowers to the EUP (its own VLIW slot); direct (tb, 300) store.
    o_ref[...] = jnp.tanh(h).astype(o_ref.dtype)


def prepare_params(params, compute_dtype=_COMPUTE_DTYPE):
    """One-time prep: cast weights to bf16, biases to f32 (1, N).

    Call once and reuse across forward calls so no per-call cast/pad XLA ops
    are emitted.
    """
    prepared = []
    for w, b in params:
        prepared.append((jnp.asarray(w, compute_dtype),
                         jnp.asarray(b, jnp.float32).reshape(1, -1)))
    return tuple(prepared)


def _pick_batch_tile(batch, block_batch):
    """Balanced batch tile: minimize tail padding, multiple of 8 sublanes,
    and give the grid >= 2 steps for large batches (v7x megacore)."""
    n_steps = max(1, pl.cdiv(batch, block_batch))
    if n_steps == 1 and batch >= 256:
        n_steps = 2                       # let both v7x TensorCores work
    tb = _round_up(pl.cdiv(batch, n_steps), _SUBLANE)
    if tb >= batch:
        tb = batch                        # single full-dim block (always legal)
    return tb


def generator_forward(x, prepared_params, *, block_batch=512):
    """x: (B, input_size) float32 -> (B, output_size) float32.

    `prepared_params` must come from `prepare_params` (bf16 weights, f32 biases).
    """
    (w1, b1), (w2, b2), (w3, b3), (w4, b4) = prepared_params
    B, d_in = x.shape
    assert d_in == w1.shape[0], (d_in, w1.shape)
    d_out = w4.shape[1]

    tb = _pick_batch_tile(B, block_batch)
    grid = (pl.cdiv(B, tb),)

    resident = lambda arr: pl.BlockSpec(arr.shape, lambda i: (0, 0))

    out = pl.pallas_call(
        _generator_kernel,
        out_shape=jax.ShapeDtypeStruct((B, d_out), jnp.float32),
        grid=grid,
        in_specs=[
            pl.BlockSpec((tb, d_in), lambda i: (i, 0)),   # streamed batch tile
            resident(w1), resident(b1),
            resident(w2), resident(b2),
            resident(w3), resident(b3),
            resident(w4), resident(b4),
        ],
        out_specs=pl.BlockSpec((tb, d_out), lambda i: (i, 0)),
        compiler_params=pltpu.CompilerParams(
            dimension_semantics=("parallel",)),
    )(x, w1, b1, w2, b2, w3, b3, w4, b4)

    return out


def _init_linear(key, fan_in, fan_out):
    # PyTorch nn.Linear default init: U(-1/sqrt(fan_in), 1/sqrt(fan_in)).
    # Weights stored as (in, out) so the kernel computes y = x @ W + b.
    kw, kb = jax.random.split(key)
    bound = 1.0 / np.sqrt(fan_in)
    w = jax.random.uniform(kw, (fan_in, fan_out), jnp.float32, -bound, bound)
    b = jax.random.uniform(kb, (fan_out,), jnp.float32, -bound, bound)
    return w, b


def make_params(key, input_size=LENGTH_INPUT, output_size=OUTPUT_SIZE):
    k1, k2, k3, k4 = jax.random.split(key, 4)
    return (
        _init_linear(k1, input_size, 128),   # Linear(input_size, 128)
        _init_linear(k2, 128, 256),          # Linear(128, 256)
        _init_linear(k3, 256, 512),          # Linear(256, 512)
        _init_linear(k4, 512, output_size),  # Linear(512, output_size)
    )


def _reference_forward(x, params, compute_dtype=_COMPUTE_DTYPE):
    # Mirrors the kernel math (bf16 matmul operands, f32 accumulation,
    # f32 bias-add/ReLU).  Differs from a pure-f32 PyTorch Generator by up to
    # ~1e-2 relative due to the intentional bf16 precision choice.
    (w1, b1), (w2, b2), (w3, b3), (w4, b4) = params
    h = x.astype(compute_dtype)
    h = jnp.maximum(jnp.dot(h, w1.astype(compute_dtype),
                            preferred_element_type=jnp.float32) + b1, 0.0)
    h = jnp.maximum(jnp.dot(h.astype(compute_dtype), w2.astype(compute_dtype),
                            preferred_element_type=jnp.float32) + b2, 0.0)
    h = jnp.maximum(jnp.dot(h.astype(compute_dtype), w3.astype(compute_dtype),
                            preferred_element_type=jnp.float32) + b3, 0.0)
    h = jnp.dot(h.astype(compute_dtype), w4.astype(compute_dtype),
                preferred_element_type=jnp.float32) + b4
    return jnp.tanh(h)


if __name__ == "__main__":
    key = jax.random.PRNGKey(0)
    k_params, k_x = jax.random.split(key)

    params = make_params(k_params)
    prepared = prepare_params(params)          # one-time weight prep (cached)

    batch = 8
    x = jax.random.normal(k_x, (batch, LENGTH_INPUT), jnp.float32)

    out = jax.block_until_ready(generator_forward(x, prepared))
    ref = jax.block_until_ready(_reference_forward(x, params))

    assert out.shape == (batch, OUTPUT_SIZE), out.shape
    np.testing.assert_allclose(np.asarray(out), np.asarray(ref),
                               rtol=2e-2, atol=2e-2)

    print("KERNEL_OK")
</pallas_src>

<mosaic_0001>
module attributes {stable_mosaic.version = 11 : i64} {
  func.func @_generator_kernel(%arg0: i32, %arg1: memref<8x300xf32, #tpu.memory_space<vmem>>, %arg2: memref<300x128xbf16, #tpu.memory_space<vmem>>, %arg3: memref<1x128xf32, #tpu.memory_space<vmem>>, %arg4: memref<128x256xbf16, #tpu.memory_space<vmem>>, %arg5: memref<1x256xf32, #tpu.memory_space<vmem>>, %arg6: memref<256x512xbf16, #tpu.memory_space<vmem>>, %arg7: memref<1x512xf32, #tpu.memory_space<vmem>>, %arg8: memref<512x300xbf16, #tpu.memory_space<vmem>>, %arg9: memref<1x300xf32, #tpu.memory_space<vmem>>, %arg10: memref<8x300xf32, #tpu.memory_space<vmem>>) attributes {dimension_semantics = [#tpu.dimension_semantics<parallel>], iteration_bounds = array<i64: 1>, scalar_prefetch = 0 : i64, scratch_operands = 0 : i64, tpu.core_type = #tpu.core_type<tc>, window_params = [{transform_indices = @transform_0, window_bounds = array<i64: 8, 300>}, {pipeline_mode = #tpu.pipeline_mode<synchronous>, transform_indices = @transform_1, window_bounds = array<i64: 300, 128>}, {pipeline_mode = #tpu.pipeline_mode<synchronous>, transform_indices = @transform_2, window_bounds = array<i64: 1, 128>}, {pipeline_mode = #tpu.pipeline_mode<synchronous>, transform_indices = @transform_3, window_bounds = array<i64: 128, 256>}, {pipeline_mode = #tpu.pipeline_mode<synchronous>, transform_indices = @transform_4, window_bounds = array<i64: 1, 256>}, {pipeline_mode = #tpu.pipeline_mode<synchronous>, transform_indices = @transform_5, window_bounds = array<i64: 256, 512>}, {pipeline_mode = #tpu.pipeline_mode<synchronous>, transform_indices = @transform_6, window_bounds = array<i64: 1, 512>}, {pipeline_mode = #tpu.pipeline_mode<synchronous>, transform_indices = @transform_7, window_bounds = array<i64: 512, 300>}, {pipeline_mode = #tpu.pipeline_mode<synchronous>, transform_indices = @transform_8, window_bounds = array<i64: 1, 300>}, {transform_indices = @transform_9, window_bounds = array<i64: 8, 300>}]} {
    %c0 = arith.constant 0 : index
    %c0_0 = arith.constant 0 : index
    %0 = vector.load %arg1[%c0, %c0_0] : memref<8x300xf32, #tpu.memory_space<vmem>>, vector<8x300xf32>
    %1 = arith.truncf %0 : vector<8x300xf32> to vector<8x300xbf16>
    %c0_1 = arith.constant 0 : index
    %c0_2 = arith.constant 0 : index
    %2 = vector.load %arg2[%c0_1, %c0_2] : memref<300x128xbf16, #tpu.memory_space<vmem>>, vector<300x128xbf16>
    %cst = arith.constant dense<0.000000e+00> : vector<8x128xf32>
    %3 = tpu.matmul %1, %2, %cst {dimension_numbers = #tpu.dot_dimension_numbers<[1], [0], [0], [1], [0, 0, 1, 1], [], []>} : vector<8x300xbf16>, vector<300x128xbf16>, vector<8x128xf32> -> vector<8x128xf32>
    %c0_3 = arith.constant 0 : index
    %c0_4 = arith.constant 0 : index
    %4 = vector.load %arg3[%c0_3, %c0_4] : memref<1x128xf32, #tpu.memory_space<vmem>>, vector<1x128xf32>
    %5 = vector.broadcast %4 : vector<1x128xf32> to vector<8x128xf32>
    %6 = arith.addf %3, %5 : vector<8x128xf32>
    %cst_5 = arith.constant 0.000000e+00 : f32
    %7 = vector.broadcast %cst_5 : f32 to vector<8x128xf32>
    %8 = arith.maximumf %6, %7 : vector<8x128xf32>
    %9 = arith.truncf %8 : vector<8x128xf32> to vector<8x128xbf16>
    %c0_6 = arith.constant 0 : index
    %c0_7 = arith.constant 0 : index
    %10 = vector.load %arg4[%c0_6, %c0_7] : memref<128x256xbf16, #tpu.memory_space<vmem>>, vector<128x256xbf16>
    %cst_8 = arith.constant dense<0.000000e+00> : vector<8x256xf32>
    %11 = tpu.matmul %9, %10, %cst_8 {dimension_numbers = #tpu.dot_dimension_numbers<[1], [0], [0], [1], [0, 0, 1, 1], [], []>} : vector<8x128xbf16>, vector<128x256xbf16>, vector<8x256xf32> -> vector<8x256xf32>
    %c0_9 = arith.constant 0 : index
    %c0_10 = arith.constant 0 : index
    %12 = vector.load %arg5[%c0_9, %c0_10] : memref<1x256xf32, #tpu.memory_space<vmem>>, vector<1x256xf32>
    %13 = vector.broadcast %12 : vector<1x256xf32> to vector<8x256xf32>
    %14 = arith.addf %11, %13 : vector<8x256xf32>
    %cst_11 = arith.constant 0.000000e+00 : f32
    %15 = vector.broadcast %cst_11 : f32 to vector<8x256xf32>
    %16 = arith.maximumf %14, %15 : vector<8x256xf32>
    %17 = arith.truncf %16 : vector<8x256xf32> to vector<8x256xbf16>
    %c0_12 = arith.constant 0 : index
    %c0_13 = arith.constant 0 : index
    %18 = vector.load %arg6[%c0_12, %c0_13] : memref<256x512xbf16, #tpu.memory_space<vmem>>, vector<256x512xbf16>
    %cst_14 = arith.constant dense<0.000000e+00> : vector<8x512xf32>
    %19 = tpu.matmul %17, %18, %cst_14 {dimension_numbers = #tpu.dot_dimension_numbers<[1], [0], [0], [1], [0, 0, 1, 1], [], []>} : vector<8x256xbf16>, vector<256x512xbf16>, vector<8x512xf32> -> vector<8x512xf32>
    %c0_15 = arith.constant 0 : index
    %c0_16 = arith.constant 0 : index
    %20 = vector.load %arg7[%c0_15, %c0_16] : memref<1x512xf32, #tpu.memory_space<vmem>>, vector<1x512xf32>
    %21 = vector.broadcast %20 : vector<1x512xf32> to vector<8x512xf32>
    %22 = arith.addf %19, %21 : vector<8x512xf32>
    %cst_17 = arith.constant 0.000000e+00 : f32
    %23 = vector.broadcast %cst_17 : f32 to vector<8x512xf32>
    %24 = arith.maximumf %22, %23 : vector<8x512xf32>
    %25 = arith.truncf %24 : vector<8x512xf32> to vector<8x512xbf16>
    %c0_18 = arith.constant 0 : index
    %c0_19 = arith.constant 0 : index
    %26 = vector.load %arg8[%c0_18, %c0_19] : memref<512x300xbf16, #tpu.memory_space<vmem>>, vector<512x300xbf16>
    %cst_20 = arith.constant dense<0.000000e+00> : vector<8x300xf32>
    %27 = tpu.matmul %25, %26, %cst_20 {dimension_numbers = #tpu.dot_dimension_numbers<[1], [0], [0], [1], [0, 0, 1, 1], [], []>} : vector<8x512xbf16>, vector<512x300xbf16>, vector<8x300xf32> -> vector<8x300xf32>
    %c0_21 = arith.constant 0 : index
    %c0_22 = arith.constant 0 : index
    %28 = vector.load %arg9[%c0_21, %c0_22] : memref<1x300xf32, #tpu.memory_space<vmem>>, vector<1x300xf32>
    %29 = vector.broadcast %28 : vector<1x300xf32> to vector<8x300xf32>
    %30 = arith.addf %27, %29 : vector<8x300xf32>
    %31 = math.tanh %30 : vector<8x300xf32>
    %c0_23 = arith.constant 0 : index
    %c0_24 = arith.constant 0 : index
    %32 = vector.load %arg10[%c0_23, %c0_24] : memref<8x300xf32, #tpu.memory_space<vmem>>, vector<8x300xf32>
    tpu.vector_store %arg10[%c0_23, %c0_24], %31 {strides = array<i32>} : memref<8x300xf32, #tpu.memory_space<vmem>>, vector<8x300xf32>,
    return
  }
  func.func @transform_0(%arg0: i32) -> (i32, i32) {
    %c0_i32 = arith.constant 0 : i32
    %c0_i32_0 = arith.constant 0 : i32
    return %arg0, %c0_i32 : i32, i32
  }
  func.func @transform_1(%arg0: i32) -> (i32, i32) {
    %c0_i32 = arith.constant 0 : i32
    %c0_i32_0 = arith.constant 0 : i32
    %c0_i32_1 = arith.constant 0 : i32
    return %c0_i32, %c0_i32_0 : i32, i32
  }
  func.func @transform_2(%arg0: i32) -> (i32, i32) {
    %c0_i32 = arith.constant 0 : i32
    %c0_i32_0 = arith.constant 0 : i32
    %c0_i32_1 = arith.constant 0 : i32
    return %c0_i32, %c0_i32_0 : i32, i32
  }
  func.func @transform_3(%arg0: i32) -> (i32, i32) {
    %c0_i32 = arith.constant 0 : i32
    %c0_i32_0 = arith.constant 0 : i32
    %c0_i32_1 = arith.constant 0 : i32
    return %c0_i32, %c0_i32_0 : i32, i32
  }
  func.func @transform_4(%arg0: i32) -> (i32, i32) {
    %c0_i32 = arith.constant 0 : i32
    %c0_i32_0 = arith.constant 0 : i32
    %c0_i32_1 = arith.constant 0 : i32
    return %c0_i32, %c0_i32_0 : i32, i32
  }
  func.func @transform_5(%arg0: i32) -> (i32, i32) {
    %c0_i32 = arith.constant 0 : i32
    %c0_i32_0 = arith.constant 0 : i32
    %c0_i32_1 = arith.constant 0 : i32
    return %c0_i32, %c0_i32_0 : i32, i32
  }
  func.func @transform_6(%arg0: i32) -> (i32, i32) {
    %c0_i32 = arith.constant 0 : i32
    %c0_i32_0 = arith.constant 0 : i32
    %c0_i32_1 = arith.constant 0 : i32
    return %c0_i32, %c0_i32_0 : i32, i32
  }
  func.func @transform_7(%arg0: i32) -> (i32, i32) {
    %c0_i32 = arith.constant 0 : i32
    %c0_i32_0 = arith.constant 0 : i32
    %c0_i32_1 = arith.constant 0 : i32
    return %c0_i32, %c0_i32_0 : i32, i32
  }
  func.func @transform_8(%arg0: i32) -> (i32, i32) {
    %c0_i32 = arith.constant 0 : i32
    %c0_i32_0 = arith.constant 0 : i32
    %c0_i32_1 = arith.constant 0 : i32
    return %c0_i32, %c0_i32_0 : i32, i32
  }
  func.func @transform_9(%arg0: i32) -> (i32, i32) {
    %c0_i32 = arith.constant 0 : i32
    %c0_i32_0 = arith.constant 0 : i32
    return %arg0, %c0_i32 : i32, i32
  }
}

</mosaic_0001>

<bundles_post_ra>
// kernel: tpu_custom_call.1
= control target key start
LH: loop header
LB: loop body
LE: loop exit
PB: predicated region body
PF: predicated region fallthrough
CT: control target
= control target key end

     0   :  { %v2360_v21 = vmov 0.0   ;;  %vm2361_vm0 = vmmov 0   ;;  %vm202_vm1 = vcmask 1045504   ;;  %vm198_vm2 = vcmask 359424   ;;  %s3063_s0 = inlined_call_operand.vmem [shape: f32[8,300], index: 0, kind: input, shape index: {}]   ;;  %s3064_s1 = inlined_call_operand.vmem [shape: bf16[300,128], index: 1, kind: input, shape index: {}]   ;;  %s3065_s2 = inlined_call_operand.vmem [shape: f32[1,128], index: 2, kind: input, shape index: {}]   ;;  %s3066_s3 = inlined_call_operand.vmem [shape: bf16[128,256], index: 3, kind: input, shape index: {}]   ;;  %s3067_s4 = inlined_call_operand.vmem [shape: f32[1,256], index: 4, kind: input, shape index: {}]   ;;  %s3068_s5 = inlined_call_operand.vmem [shape: bf16[256,512], index: 5, kind: input, shape index: {}]   ;;  %s3069_s6 = inlined_call_operand.vmem [shape: f32[1,512], index: 6, kind: input, shape index: {}]   ;;  %s3070_s7 = inlined_call_operand.vmem [shape: bf16[512,300], index: 7, kind: input, shape index: {}]   ;;  %s3071_s8 = inlined_call_operand.vmem [shape: f32[1,300], index: 8, kind: input, shape index: {}]   ;;  %s3072_s9 = inlined_call_operand.hbm [shape: f32[8,300], index: 9, kind: output, shape index: {}]  }
   0x1   :  { %v2063_v0 = vld [vmem:[%s3064_s1 + $0x40] sm:$0xff]   ;;  %v2065_v2 = vld [vmem:[%s3064_s1 + $0x48] sm:$0xff]   ;;  %v2067_v4 = vld [vmem:[%s3064_s1 + $0x50] sm:$0xff]  }
   0x2   :  { %v2064_v1 = vld [vmem:[%s3064_s1] sm:$0xff]   ;;  %1973 = vmatprep.subr.bf16.mxu1 %v2063_v0  ;;  %v2066_v3 = vld [vmem:[%s3064_s1 + $0x8] sm:$0xff]   ;;  %v2068_v5 = vld [vmem:[%s3064_s1 + $0x10] sm:$0xff]  }
   0x3   :  { %1974 = vmatpush3.bf16.msra.mxu1 %v2064_v1  ;;  %v2069_v6 = vld [vmem:[%s3064_s1 + $0x58] sm:$0xff]   ;;  %v2071_v8 = vld [vmem:[%s3064_s1 + $0x60] sm:$0xff]   ;;  %v2073_v10 = vld [vmem:[%s3064_s1 + $0x68] sm:$0xff]  }
   0x4   :  { %1975 = vmatprep.subr.bf16.mxu1 %v2065_v2  ;;  %v2070_v7 = vld [vmem:[%s3064_s1 + $0x18] sm:$0xff]   ;;  %v2072_v9 = vld [vmem:[%s3064_s1 + $0x20] sm:$0xff]   ;;  %v35_v11 = vld [vmem:[%s3063_s0 + $0x8] sm:$0xff] }
   0x5   :  { %v38_v12 = vpack.c.bf16 %v35_v11, %v35_v11  ;;  %v2074_v13 = vld [vmem:[%s3064_s1 + $0x28] sm:$0xff]   ;;  %v2075_v14 = vld [vmem:[%s3064_s1 + $0x70] sm:$0xff]   ;;  %v2077_v16 = vld [vmem:[%s3064_s1 + $0x78] sm:$0xff]  }
   0x6   :  { %v2076_v15 = vld [vmem:[%s3064_s1 + $0x30] sm:$0xff]   ;;  %v2078_v17 = vld [vmem:[%s3064_s1 + $0x38] sm:$0xff]   ;;  %v34_v18 = vld [vmem:[%s3063_s0] sm:$0xff] }
   0x7   :  { %1976 = vmatpush3.bf16.msra.mxu1 %v2066_v3  ;;  %238 = vmatprep.mubr.bf16.mxu1 %v38_v12  ;;  %v2079_v19 = vld [vmem:[%s3064_s1 + $0x80] sm:$0xff]   ;;  %v37_v20 = vpack.c.bf16 %v34_v18, %v34_v18  ;;  %v2080_v22 = vld [vmem:[%s3064_s1 + $0x88] sm:$0xff]   ;;  %v2081_v23 = vld [vmem:[%s3064_s1 + $0x90] sm:$0x3f]  }
   0x8   :  { %1977 = vmatprep.subr.bf16.mxu1 %v2067_v4  ;;  %v36_v24 = vld [vmem:[%s3063_s0 + $0x10] sm:$0xff]  ;;  %v2084_v25 = vld [vmem:[%s3066_s3 + $0x4] ss:$8 sps:$4 sm:$0xff]   ;;  %v204_v26 = vsel %vm202_vm1, %v2081_v23, 0  ;;  %v2082_v27 = vld [vmem:[%s3066_s3] ss:$8 sps:$4 sm:$0xff]  }
   0x9   :  { %v39_v28 = vpack.c.bf16 %v36_v24, %v36_v24  ;;  %v2087_v29 = vld [vmem:[%s3066_s3 + $0x14] ss:$8 sps:$4 sm:$0xff]   ;;  %v2085_v30 = vld [vmem:[%s3066_s3 + $0x10] ss:$8 sps:$4 sm:$0xff]   ;;  %v2090_v31 = vld [vmem:[%s3066_s3 + $0x24] ss:$8 sps:$4 sm:$0xff]  }
   0xa   :  { %v2088_v32 = vld [vmem:[%s3066_s3 + $0x20] ss:$8 sps:$4 sm:$0xff]   ;;  %v2093_v33 = vld [vmem:[%s3066_s3 + $0x34] ss:$8 sps:$4 sm:$0xff]   ;;  %v2091_v34 = vld [vmem:[%s3066_s3 + $0x30] ss:$8 sps:$4 sm:$0xff]  }
   0xb   :  { %1978 = vmatpush3.bf16.msra.mxu1 %v2068_v5 }
   0xc   :  { %1979 = vmatprep.subr.bf16.mxu1 %v2069_v6 }
   0xf   :  { %1980 = vmatpush3.bf16.msra.mxu1 %v2070_v7 }
  0x10   :  { %1981 = vmatprep.subr.bf16.mxu1 %v2071_v8 }
  0x13   :  { %1982 = vmatpush3.bf16.msra.mxu1 %v2072_v9 }
  0x14   :  { %1983 = vmatprep.subr.bf16.mxu1 %v2073_v10 }
  0x17   :  { %1984 = vmatpush3.bf16.msra.mxu1 %v2074_v13 }
  0x18   :  { %1985 = vmatprep.subr.bf16.mxu1 %v2075_v14 }
  0x1b   :  { %1986 = vmatpush3.bf16.msra.mxu1 %v2076_v15 }
  0x1c   :  { %1987 = vmatprep.subr.bf16.mxu1 %v2077_v16 }
  0x1f   :  { %1988 = vmatpush3.bf16.msra.mxu1 %v2078_v17 }
  0x20   :  { %2043 = vmatprep.subr.bf16.mxu1 %v2360_v21 }
  0x22   :  { %239 = vmatmul.mubr.bf16.vlgmr.msra.gmra.mrb[0].mxu1 %v37_v20 }
  0x23   :  { %2044 = vmatpush3.bf16.msra.mxu1 %v2079_v19  ;;  %2049 = vmatprep.mubr.msk.bf16.mxu1 %vm2361_vm0, %v2360_v21 }
  0x24   :  { %2045 = vmatprep.subr.bf16.mxu1 %v2360_v21 }
  0x27   :  { %2046 = vmatpush3.bf16.msra.mxu1 %v2080_v22 }
  0x28   :  { %2047 = vmatprep.subr.bf16.mxu1 %v2360_v21 }
  0x2b   :  { %2048 = vmatpush3.bf16.msra.mxu1 %v204_v26 }
  0x2c   :  { %396 = vmatprep.subr.bf16.mxu1 %v2084_v25 }
  0x2e   :  { %2050 = vmatmul.mubr.msk.bf16.vlgmr.msra.gmra.mrb[4].mxu1 %vm198_vm2, %v39_v28 }
  0x2f   :  { %397 = vmatpush1.bf16.msra.mxu1 %v2082_v27 }
  0x30   :  { %398 = vmatprep.subr.bf16.mxu1 %v2087_v29 }
  0x33   :  { %399 = vmatpush1.bf16.msra.mxu1 %v2085_v30 }
  0x34   :  { %400 = vmatprep.subr.bf16.mxu1 %v2090_v31 }
  0x37   :  { %401 = vmatpush1.bf16.msra.mxu1 %v2088_v32 }
  0x38   :  { %402 = vmatprep.subr.bf16.mxu1 %v2093_v33 }
  0x3b   :  { %403 = vmatpush1.bf16.msra.mxu1 %v2091_v34 }
  0x3c   :  { %14 = vsyncpa [#allocation3], 0  ;;  %v2096_v35 = vld [vmem:[%s3066_s3 + $0x44] ss:$8 sps:$4 sm:$0xff]   ;;  %v2094_v36 = vld [vmem:[%s3066_s3 + $0x40] ss:$8 sps:$4 sm:$0xff]  }
  0x3d   :  { %404 = vmatprep.subr.bf16.mxu1 %v2096_v35  ;;  %v2099_v37 = vld [vmem:[%s3066_s3 + $0x54] ss:$8 sps:$4 sm:$0xff]   ;;  %v2097_v38 = vld [vmem:[%s3066_s3 + $0x50] ss:$8 sps:$4 sm:$0xff]   ;;  %v2102_v39 = vld [vmem:[%s3066_s3 + $0x64] ss:$8 sps:$4 sm:$0xff]  }
  0x3e   :  { %v2100_v40 = vld [vmem:[%s3066_s3 + $0x60] ss:$8 sps:$4 sm:$0xff]   ;;  %v2105_v41 = vld [vmem:[%s3066_s3 + $0x74] ss:$8 sps:$4 sm:$0xff]   ;;  %v2103_v42 = vld [vmem:[%s3066_s3 + $0x70] ss:$8 sps:$4 sm:$0xff]  }
  0x3f   :  { %405 = vmatpush1.bf16.msra.mxu1 %v2094_v36  ;;  %v2362_v43 = vmov 0   ;;  %v2106_v44 = vld [vmem:[%s3068_s5 + $0x4] ss:$16 sps:$4 sm:$0xff]   ;;  %v2110_v45 = vld [vmem:[%s3068_s5 + $0xc] ss:$16 sps:$4 sm:$0xff]  }
  0x40   :  { %406 = vmatprep.subr.bf16.mxu1 %v2099_v37  ;;  %428 = vmatprep.mubr.bf16.mxu1 %v2362_v43  ;;  %v2111_v46 = vld [vmem:[%s3068_s5] ss:$16 sps:$4 sm:$0xff]   ;;  %v2112_v47 = vld [vmem:[%s3068_s5 + $0x24] ss:$16 sps:$4 sm:$0xff]   ;;  %v2108_v22 = vld [vmem:[%s3068_s5 + $0x8] ss:$16 sps:$4 sm:$0xff]  }
  0x41   :  { %847 = vmatprep.subr.bf16.mxu0 %v2106_v44  ;;  %v2117_v48 = vld [vmem:[%s3068_s5 + $0x20] ss:$16 sps:$4 sm:$0xff]   ;;  %v2118_v49 = vld [vmem:[%s3068_s5 + $0x44] ss:$16 sps:$4 sm:$0xff]   ;;  %v2116_v24 = vld [vmem:[%s3068_s5 + $0x2c] ss:$16 sps:$4 sm:$0xff]  }
  0x42   :  { %848 = vmatpush1.bf16.msra.mxu0 %v2111_v46  ;;  %v2123_v50 = vld [vmem:[%s3068_s5 + $0x40] ss:$16 sps:$4 sm:$0xff]   ;;  %v2124_v51 = vld [vmem:[%s3068_s5 + $0x64] ss:$16 sps:$4 sm:$0xff]   ;;  %v2114_v25 = vld [vmem:[%s3068_s5 + $0x28] ss:$16 sps:$4 sm:$0xff]  }
  0x43   :  { %407 = vmatpush1.bf16.msra.mxu1 %v2097_v38  ;;  %849 = vmatprep.subr.bf16.mxu0 %v2112_v47  ;;  %v2129_v52 = vld [vmem:[%s3068_s5 + $0x60] ss:$16 sps:$4 sm:$0xff]   ;;  %v2130_v53 = vld [vmem:[%s3068_s5 + $0x84] ss:$16 sps:$4 sm:$0xff]   ;;  %v2122_v26 = vld [vmem:[%s3068_s5 + $0x4c] ss:$16 sps:$4 sm:$0xff]  }
  0x44   :  { %408 = vmatprep.subr.bf16.mxu1 %v2102_v39  ;;  %v2135_v54 = vld [vmem:[%s3068_s5 + $0x80] ss:$16 sps:$4 sm:$0xff]   ;;  %v2136_v55 = vld [vmem:[%s3068_s5 + $0xa4] ss:$16 sps:$4 sm:$0xff]   ;;  %v2120_v27 = vld [vmem:[%s3068_s5 + $0x48] ss:$16 sps:$4 sm:$0xff]  }
  0x45   :  { %v2141_v56 = vld [vmem:[%s3068_s5 + $0xa0] ss:$16 sps:$4 sm:$0xff]   ;;  %v2142_v57 = vld [vmem:[%s3068_s5 + $0xc4] ss:$16 sps:$4 sm:$0xff]   ;;  %v2128_v28 = vld [vmem:[%s3068_s5 + $0x6c] ss:$16 sps:$4 sm:$0xff]  }
  0x46   :  { %850 = vmatpush1.bf16.msra.mxu0 %v2117_v48  ;;  %v2147_v58 = vld [vmem:[%s3068_s5 + $0xc0] ss:$16 sps:$4 sm:$0xff]   ;;  %v2148_v59 = vld [vmem:[%s3068_s5 + $0xe4] ss:$16 sps:$4 sm:$0xff]   ;;  %v2126_v29 = vld [vmem:[%s3068_s5 + $0x68] ss:$16 sps:$4 sm:$0xff]  }
  0x47   :  { %409 = vmatpush1.bf16.msra.mxu1 %v2100_v40  ;;  %851 = vmatprep.subr.bf16.mxu0 %v2118_v49  ;;  %v2153_v60 = vld [vmem:[%s3068_s5 + $0xe0] ss:$16 sps:$4 sm:$0xff]   ;;  %v2154_v61 = vld [vmem:[%s3068_s5 + $0x104] ss:$16 sps:$4 sm:$0xff]   ;;  %v2134_v30 = vld [vmem:[%s3068_s5 + $0x8c] ss:$16 sps:$4 sm:$0xff]  }
  0x48   :  { %410 = vmatprep.subr.bf16.mxu1 %v2105_v41  ;;  %v2159_v62 = vld [vmem:[%s3068_s5 + $0x100] ss:$16 sps:$4 sm:$0xff]   ;;  %v2160_v63 = vld [vmem:[%s3068_s5 + $0x124] ss:$16 sps:$4 sm:$0xff]   ;;  %v2132_v31 = vld [vmem:[%s3068_s5 + $0x88] ss:$16 sps:$4 sm:$0xff]  }
  0x49   :  { %v2165_v0 = vld [vmem:[%s3068_s5 + $0x120] ss:$16 sps:$4 sm:$0xff]   ;;  %v2166_v1 = vld [vmem:[%s3068_s5 + $0x144] ss:$16 sps:$4 sm:$0xff]   ;;  %v2140_v32 = vld [vmem:[%s3068_s5 + $0xac] ss:$16 sps:$4 sm:$0xff]  }
  0x4a   :  { %852 = vmatpush1.bf16.msra.mxu0 %v2123_v50  ;;  %v2171_v2 = vld [vmem:[%s3068_s5 + $0x140] ss:$16 sps:$4 sm:$0xff]   ;;  %v2172_v3 = vld [vmem:[%s3068_s5 + $0x164] ss:$16 sps:$4 sm:$0xff]   ;;  %v2138_v33 = vld [vmem:[%s3068_s5 + $0xa8] ss:$16 sps:$4 sm:$0xff]  }
  0x4b   :  { %411 = vmatpush1.bf16.msra.mxu1 %v2103_v42  ;;  %853 = vmatprep.subr.bf16.mxu0 %v2124_v51  ;;  %v2177_v4 = vld [vmem:[%s3068_s5 + $0x160] ss:$16 sps:$4 sm:$0xff]   ;;  %v2178_v5 = vld [vmem:[%s3068_s5 + $0x184] ss:$16 sps:$4 sm:$0xff]   ;;  %v2146_v34 = vld [vmem:[%s3068_s5 + $0xcc] ss:$16 sps:$4 sm:$0xff]  }
  0x4c   :  { %888 = vmatprep.subr.bf16.mxu1 %v2110_v45  ;;  %v2183_v6 = vld [vmem:[%s3068_s5 + $0x180] ss:$16 sps:$4 sm:$0xff]   ;;  %v2184_v7 = vld [vmem:[%s3068_s5 + $0x1a4] ss:$16 sps:$4 sm:$0xff]   ;;  %v2144_v35 = vld [vmem:[%s3068_s5 + $0xc8] ss:$16 sps:$4 sm:$0xff]  }
  0x4d   :  { %v2189_v8 = vld [vmem:[%s3068_s5 + $0x1a0] ss:$16 sps:$4 sm:$0xff]   ;;  %v2152_v36 = vld [vmem:[%s3068_s5 + $0xec] ss:$16 sps:$4 sm:$0xff]   ;;  %v2150_v37 = vld [vmem:[%s3068_s5 + $0xe8] ss:$16 sps:$4 sm:$0xff]  }
  0x4e   :  { %854 = vmatpush1.bf16.msra.mxu0 %v2129_v52  ;;  %v1776_v14 = vld [vmem:[%s3065_s2] ss:$0 sm:$0xff]  ;;  %v2158_v38 = vld [vmem:[%s3068_s5 + $0x10c] ss:$16 sps:$4 sm:$0xff]   ;;  %v2156_v39 = vld [vmem:[%s3068_s5 + $0x108] ss:$16 sps:$4 sm:$0xff]  }
  0x4f   :  { %855 = vmatprep.subr.bf16.mxu0 %v2130_v53  ;;  %v2164_v40 = vld [vmem:[%s3068_s5 + $0x12c] ss:$16 sps:$4 sm:$0xff]   ;;  %v2162_v41 = vld [vmem:[%s3068_s5 + $0x128] ss:$16 sps:$4 sm:$0xff]   ;;  %v2190_v50 = vld [vmem:[%s3068_s5 + $0x1c4] ss:$16 sps:$4 sm:$0xff]  }
  0x50   :  { %v2170_v42 = vld [vmem:[%s3068_s5 + $0x14c] ss:$16 sps:$4 sm:$0xff]   ;;  %v2168_v43 = vld [vmem:[%s3068_s5 + $0x148] ss:$16 sps:$4 sm:$0xff]   ;;  %v2195_v53 = vld [vmem:[%s3068_s5 + $0x1c0] ss:$16 sps:$4 sm:$0xff]  }
  0x51   :  { %v2176_v44 = vld [vmem:[%s3068_s5 + $0x16c] ss:$16 sps:$4 sm:$0xff]   ;;  %v2174_v45 = vld [vmem:[%s3068_s5 + $0x168] ss:$16 sps:$4 sm:$0xff]  }
  0x52   :  { %856 = vmatpush1.bf16.msra.mxu0 %v2135_v54  ;;  %v2182_v46 = vld [vmem:[%s3068_s5 + $0x18c] ss:$16 sps:$4 sm:$0xff]   ;;  %v2180_v47 = vld [vmem:[%s3068_s5 + $0x188] ss:$16 sps:$4 sm:$0xff]   ;;  %v2196_v54 = vld [vmem:[%s3068_s5 + $0x1e4] ss:$16 sps:$4 sm:$0xff]  }
  0x53   :  { %857 = vmatprep.subr.bf16.mxu0 %v2136_v55  ;;  %v2188_v48 = vld [vmem:[%s3068_s5 + $0x1ac] ss:$16 sps:$4 sm:$0xff]   ;;  %v2186_v49 = vld [vmem:[%s3068_s5 + $0x1a8] ss:$16 sps:$4 sm:$0xff]  }
  0x54   :  { %v2194_v51 = vld [vmem:[%s3068_s5 + $0x1cc] ss:$16 sps:$4 sm:$0xff]   ;;  %v2192_v52 = vld [vmem:[%s3068_s5 + $0x1c8] ss:$16 sps:$4 sm:$0xff]  }
  0x55   :  { %v2200_v55 = vld [vmem:[%s3068_s5 + $0x1ec] ss:$16 sps:$4 sm:$0xff]  }
  0x56   :  { %858 = vmatpush1.bf16.msra.mxu0 %v2141_v56  ;;  %v2198_v56 = vld [vmem:[%s3068_s5 + $0x1e8] ss:$16 sps:$4 sm:$0xff]  }
  0x57   :  { %859 = vmatprep.subr.bf16.mxu0 %v2142_v57  ;;  %v2201_v57 = vld [vmem:[%s3068_s5 + $0x1e0] ss:$16 sps:$4 sm:$0xff]  }
  0x5a   :  { %860 = vmatpush1.bf16.msra.mxu0 %v2147_v58  ;;  %v2204_v58 = vld [vmem:[%s3070_s7 + $0x4] ss:$12 sps:$4 sm:$0xff]  }
  0x5b   :  { %861 = vmatprep.subr.bf16.mxu0 %v2148_v59  ;;  %v2229_v59 = vld [vmem:[%s3070_s7 + $0xc8] ss:$12 sps:$4 sm:$0xff]  }
  0x5e   :  { %862 = vmatpush1.bf16.msra.mxu0 %v2153_v60  ;;  %v306_v60 = vlaneseq }
  0x5f   :  { %863 = vmatprep.subr.bf16.mxu0 %v2154_v61 }
  0x60   :  { %v2730_v61 = vshrl.u32 %v306_v60, 7  ;;  %v2269_v60 = vld [vmem:[%s3070_s7 + $0x248] ss:$12 sps:$4 sm:$0xff]  }
  0x62   :  { %864 = vmatpush1.bf16.msra.mxu0 %v2159_v62  ;;  %v2733_v62 = vsub.s32 0, %v2730_v61 }
  0x63   :  { %865 = vmatprep.subr.bf16.mxu0 %v2160_v63  ;;  %v304_v63 = vld [vmem:[%s3067_s4] sm:$0x3] }
  0x66   :  { %866 = vmatpush1.bf16.msra.mxu0 %v2165_v0  ;;  %v2739_v0 = vsub.s32 1, %v2730_v61 }
  0x67   :  { %867 = vmatprep.subr.bf16.mxu0 %v2166_v1  ;;  %v309_v1 = vrot.slane %v304_v63, %v2733_v62 }
  0x6a   :  { %868 = vmatpush1.bf16.msra.mxu0 %v2171_v2  ;;  %v313_v2 = vrot.slane %v304_v63, %v2739_v0  ;;  %v2890_v63 = vld [vmem:[%s3069_s6] sm:$0xf] }
  0x6b   :  { %869 = vmatprep.subr.bf16.mxu0 %v2172_v3 }
  0x6e   :  { %870 = vmatpush1.bf16.msra.mxu0 %v2177_v4 }
  0x6f   :  { %871 = vmatprep.subr.bf16.mxu0 %v2178_v5 }
  0x72   :  { %872 = vmatpush1.bf16.msra.mxu0 %v2183_v6 }
  0x73   :  { %873 = vmatprep.subr.bf16.mxu0 %v2184_v7 }
  0x76   :  { %874 = vmatpush1.bf16.msra.mxu0 %v2189_v8 }
  0x77   :  { %875 = vmatprep.subr.bf16.mxu0 %v2190_v50  ;;  %v2251_v50 = vld [vmem:[%s3070_s7 + $0x138] ss:$12 sps:$4 sm:$0xff]  }
  0x7a   :  { %876 = vmatpush1.bf16.msra.mxu0 %v2195_v53  ;;  %v2256_v53 = vld [vmem:[%s3070_s7 + $0x150] ss:$12 sps:$4 sm:$0xff]  }
  0x7b   :  { %877 = vmatprep.subr.bf16.mxu0 %v2196_v54  ;;  %v2260_v54 = vld [vmem:[%s3070_s7 + $0x98] ss:$12 sps:$4 sm:$0xff]  }
  0x7e   :  { %878 = vmatpush1.bf16.msra.mxu0 %v2201_v57  ;;  %v2261_v57 = vld [vmem:[%s3070_s7 + $0x168] ss:$12 sps:$4 sm:$0xff]  }
  0x7f   :  { %1594 = vmatprep.subr.bf16.mxu0 %v2204_v58  ;;  %v2265_v58 = vld [vmem:[%s3070_s7 + $0xb0] ss:$12 sps:$4 sm:$0xff]  }
  0xf5   :  { %v1989_v9 = vpop.f32.mrb[0].mxu1 }
  0xf6   :  { %v1990_v10 = vpop.f32.mrb[1].mxu1 }
  0xf7   :  { %v1991_v11 = vadd.f32 %v1990_v10, %v1989_v9  ;;  %v1992_v12 = vpop.f32.mrb[2].mxu1 }
  0xf8   :  { %v1993_v13 = vpop.f32.mrb[3].mxu1  ;;  %v2202_v12 = vld [vmem:[%s3070_s7] ss:$12 sps:$4 sm:$0xff]  }
  0xf9   :  { %v241_v15 = vadd.f32 %v1991_v11, %v1776_v14  ;;  %v2230_v13 = vld [vmem:[%s3070_s7 + $0x8] ss:$12 sps:$4 sm:$0xff]  }
 0x101   :  { %v280_v16 = vpop.f32.mrb[4].mxu1 }
 0x102   :  { %v281_v17 = vadd.f32 %v280_v16, %v241_v15  ;;  %v2051_v18 = vpop.f32.mrb[5].mxu1  ;;  %v2207_v15 = vld [vmem:[%s3070_s7 + $0x1c] ss:$12 sps:$4 sm:$0xff]   ;;  %v2234_v16 = vld [vmem:[%s3070_s7 + $0xe0] ss:$12 sps:$4 sm:$0xff]  }
 0x103   :  { %v283_v19 = vpop.f32.mrb[6].mxu1  ;;  %v2235_v18 = vld [vmem:[%s3070_s7 + $0x20] ss:$12 sps:$4 sm:$0xff]  }
 0x104   :  { %v286_v20 = vmax.f32 %v281_v17, 0.0  ;;  %v2052_v21 = vpop.f32.mrb[7].mxu1  ;;  %v2205_v17 = vld [vmem:[%s3070_s7 + $0x18] ss:$12 sps:$4 sm:$0xff]   ;;  %v2210_v19 = vld [vmem:[%s3070_s7 + $0x34] ss:$12 sps:$4 sm:$0xff]  }
 0x105   :  { %v2208_v21 = vld [vmem:[%s3070_s7 + $0x30] ss:$12 sps:$4 sm:$0xff]  }
 0x106   :  { %v287_v23 = vpack.c.bf16 %v286_v20, %v286_v20  ;;  %v2239_v20 = vld [vmem:[%s3070_s7 + $0xf8] ss:$12 sps:$4 sm:$0xff]  }
 0x108   :  { %429 = vmatmul.mubr.bf16.vlgmr.msra.gmra.mrb[8].mxu1 %v287_v23  ;;  %v2213_v23 = vld [vmem:[%s3070_s7 + $0x4c] ss:$12 sps:$4 sm:$0xff]  }
 0x109   :  { %889 = vmatpush1.bf16.msra.mxu1 %v2108_v22  ;;  %v2240_v22 = vld [vmem:[%s3070_s7 + $0x38] ss:$12 sps:$4 sm:$0xff]  }
 0x10a   :  { %890 = vmatprep.subr.bf16.mxu1 %v2116_v24  ;;  %v2244_v24 = vld [vmem:[%s3070_s7 + $0x110] ss:$12 sps:$4 sm:$0xff]  }
 0x10d   :  { %891 = vmatpush1.bf16.msra.mxu1 %v2114_v25  ;;  %v2211_v25 = vld [vmem:[%s3070_s7 + $0x48] ss:$12 sps:$4 sm:$0xff]  }
 0x10e   :  { %892 = vmatprep.subr.bf16.mxu1 %v2122_v26  ;;  %v2245_v26 = vld [vmem:[%s3070_s7 + $0x50] ss:$12 sps:$4 sm:$0xff]  }
 0x111   :  { %893 = vmatpush1.bf16.msra.mxu1 %v2120_v27  ;;  %v2216_v27 = vld [vmem:[%s3070_s7 + $0x64] ss:$12 sps:$4 sm:$0xff]  }
 0x112   :  { %894 = vmatprep.subr.bf16.mxu1 %v2128_v28  ;;  %v2249_v28 = vld [vmem:[%s3070_s7 + $0x128] ss:$12 sps:$4 sm:$0xff]  }
 0x115   :  { %895 = vmatpush1.bf16.msra.mxu1 %v2126_v29  ;;  %v2214_v29 = vld [vmem:[%s3070_s7 + $0x60] ss:$12 sps:$4 sm:$0xff]  }
 0x116   :  { %896 = vmatprep.subr.bf16.mxu1 %v2134_v30  ;;  %v2250_v30 = vld [vmem:[%s3070_s7 + $0x68] ss:$12 sps:$4 sm:$0xff]  }
 0x119   :  { %897 = vmatpush1.bf16.msra.mxu1 %v2132_v31  ;;  %v2219_v31 = vld [vmem:[%s3070_s7 + $0x7c] ss:$12 sps:$4 sm:$0xff]  }
 0x11a   :  { %898 = vmatprep.subr.bf16.mxu1 %v2140_v32  ;;  %v2254_v32 = vld [vmem:[%s3070_s7 + $0x140] ss:$12 sps:$4 sm:$0xff]  }
 0x11d   :  { %899 = vmatpush1.bf16.msra.mxu1 %v2138_v33  ;;  %v2217_v33 = vld [vmem:[%s3070_s7 + $0x78] ss:$12 sps:$4 sm:$0xff]  }
 0x11e   :  { %900 = vmatprep.subr.bf16.mxu1 %v2146_v34  ;;  %v2255_v34 = vld [vmem:[%s3070_s7 + $0x80] ss:$12 sps:$4 sm:$0xff]  }
 0x121   :  { %901 = vmatpush1.bf16.msra.mxu1 %v2144_v35  ;;  %v2222_v35 = vld [vmem:[%s3070_s7 + $0x94] ss:$12 sps:$4 sm:$0xff]  }
 0x122   :  { %902 = vmatprep.subr.bf16.mxu1 %v2152_v36  ;;  %v2220_v36 = vld [vmem:[%s3070_s7 + $0x90] ss:$12 sps:$4 sm:$0xff]  }
 0x125   :  { %903 = vmatpush1.bf16.msra.mxu1 %v2150_v37  ;;  %v2225_v37 = vld [vmem:[%s3070_s7 + $0xac] ss:$12 sps:$4 sm:$0xff]  }
 0x126   :  { %904 = vmatprep.subr.bf16.mxu1 %v2158_v38  ;;  %v2223_v38 = vld [vmem:[%s3070_s7 + $0xa8] ss:$12 sps:$4 sm:$0xff]  }
 0x129   :  { %905 = vmatpush1.bf16.msra.mxu1 %v2156_v39  ;;  %v2228_v39 = vld [vmem:[%s3070_s7 + $0xc4] ss:$12 sps:$4 sm:$0xff]  }
 0x12a   :  { %906 = vmatprep.subr.bf16.mxu1 %v2164_v40  ;;  %v2226_v40 = vld [vmem:[%s3070_s7 + $0xc0] ss:$12 sps:$4 sm:$0xff]  }
 0x12d   :  { %907 = vmatpush1.bf16.msra.mxu1 %v2162_v41  ;;  %v2233_v41 = vld [vmem:[%s3070_s7 + $0xdc] ss:$12 sps:$4 sm:$0xff]  }
 0x12e   :  { %908 = vmatprep.subr.bf16.mxu1 %v2170_v42  ;;  %v2231_v42 = vld [vmem:[%s3070_s7 + $0xd8] ss:$12 sps:$4 sm:$0xff]  }
 0x131   :  { %909 = vmatpush1.bf16.msra.mxu1 %v2168_v43  ;;  %v2238_v43 = vld [vmem:[%s3070_s7 + $0xf4] ss:$12 sps:$4 sm:$0xff]  }
 0x132   :  { %910 = vmatprep.subr.bf16.mxu1 %v2176_v44  ;;  %v2236_v44 = vld [vmem:[%s3070_s7 + $0xf0] ss:$12 sps:$4 sm:$0xff]  }
 0x135   :  { %911 = vmatpush1.bf16.msra.mxu1 %v2174_v45  ;;  %v2243_v45 = vld [vmem:[%s3070_s7 + $0x10c] ss:$12 sps:$4 sm:$0xff]  }
 0x136   :  { %912 = vmatprep.subr.bf16.mxu1 %v2182_v46  ;;  %v2241_v46 = vld [vmem:[%s3070_s7 + $0x108] ss:$12 sps:$4 sm:$0xff]  }
 0x139   :  { %913 = vmatpush1.bf16.msra.mxu1 %v2180_v47  ;;  %v2248_v47 = vld [vmem:[%s3070_s7 + $0x124] ss:$12 sps:$4 sm:$0xff]  }
 0x13a   :  { %914 = vmatprep.subr.bf16.mxu1 %v2188_v48  ;;  %v2246_v48 = vld [vmem:[%s3070_s7 + $0x120] ss:$12 sps:$4 sm:$0xff]  }
 0x13d   :  { %915 = vmatpush1.bf16.msra.mxu1 %v2186_v49  ;;  %v2253_v49 = vld [vmem:[%s3070_s7 + $0x13c] ss:$12 sps:$4 sm:$0xff]  }
 0x13e   :  { %916 = vmatprep.subr.bf16.mxu1 %v2194_v51  ;;  %v2258_v51 = vld [vmem:[%s3070_s7 + $0x154] ss:$12 sps:$4 sm:$0xff]  }
 0x141   :  { %917 = vmatpush1.bf16.msra.mxu1 %v2192_v52  ;;  %v2259_v52 = vld [vmem:[%s3070_s7 + $0x158] ss:$12 sps:$4 sm:$0xff]  }
 0x142   :  { %918 = vmatprep.subr.bf16.mxu1 %v2200_v55  ;;  %v2263_v55 = vld [vmem:[%s3070_s7 + $0x16c] ss:$12 sps:$4 sm:$0xff]  }
 0x145   :  { %919 = vmatpush1.bf16.msra.mxu1 %v2198_v56  ;;  %v2264_v56 = vld [vmem:[%s3070_s7 + $0x170] ss:$12 sps:$4 sm:$0xff]  }
 0x146   :  { %1999 = vmatprep.subr.bf16.mxu1 %v2229_v59  ;;  %v2268_v59 = vld [vmem:[%s3070_s7 + $0x184] ss:$12 sps:$4 sm:$0xff]  }
 0x1db   :  { %v430_v3 = vpop.f32.mrb[8].mxu1 }
 0x1dc   :  { %v431_v4 = vadd.f32 %v430_v3, %v309_v1  ;;  %v432_v5 = vpop.f32.mrb[9].mxu1  ;;  %v521_v1 = vsub.s32 3, %v2730_v61  ;;  %v514_v3 = vrot.slane %v2890_v63, %v2739_v0 }
 0x1dd   :  { %v433_v6 = vadd.f32 %v432_v5, %v313_v2  ;;  %v434_v7 = vpop.f32.mrb[10].mxu1  ;;  %v510_v2 = vrot.slane %v2890_v63, %v2733_v62 }
 0x1de   :  { %v437_v8 = vmax.f32 %v431_v4, 0.0  ;;  %v435_v9 = vpop.f32.mrb[11].mxu1  ;;  %v522_v4 = vrot.slane %v2890_v63, %v521_v1  ;;  %v2312_v1 = vld [vmem:[%s3070_s7 + $0x270] ss:$12 sps:$4 sm:$0xff]  }
 0x1df   :  { %v438_v10 = vmax.f32 %v433_v6, 0.0 }
 0x1e0   :  { %v439_v14 = vpack.c.bf16 %v437_v8, %v437_v8 }
 0x1e1   :  { %v440_v11 = vpack.c.bf16 %v438_v10, %v438_v10 }
 0x1e3   :  { %879 = vmatprep.mubr.bf16.mxu0 %v440_v11  ;;  %920 = vmatprep.mubr.bf16.mxu1 %v440_v11 }
 0x1e4   :  { %880 = vmatmul.mubr.bf16.vlgmr.msra.gmra.mrb[0].mxu0 %v439_v14  ;;  %921 = vmatmul.mubr.bf16.vlgmr.msra.gmra.mrb[12].mxu1 %v439_v14 }
 0x1e5   :  { %1595 = vmatpush1.bf16.msra.mxu0 %v2202_v12  ;;  %2000 = vmatpush3.bf16.msra.mxu1 %v2230_v13 }
 0x1e6   :  { %1596 = vmatprep.subr.bf16.mxu0 %v2207_v15  ;;  %2001 = vmatprep.subr.bf16.mxu1 %v2234_v16 }
 0x1e9   :  { %1597 = vmatpush1.bf16.msra.mxu0 %v2205_v17  ;;  %2002 = vmatpush3.bf16.msra.mxu1 %v2235_v18 }
 0x1ea   :  { %1598 = vmatprep.subr.bf16.mxu0 %v2210_v19  ;;  %2003 = vmatprep.subr.bf16.mxu1 %v2239_v20  ;;  %v2266_v20 = vld [vmem:[%s3070_s7 + $0x180] ss:$12 sps:$4 sm:$0xff]  }
 0x1ed   :  { %1599 = vmatpush1.bf16.msra.mxu0 %v2208_v21  ;;  %2004 = vmatpush3.bf16.msra.mxu1 %v2240_v22  ;;  %v2270_v21 = vld [vmem:[%s3070_s7 + $0x188] ss:$12 sps:$4 sm:$0xff]  }
 0x1ee   :  { %1600 = vmatprep.subr.bf16.mxu0 %v2213_v23  ;;  %2005 = vmatprep.subr.bf16.mxu1 %v2244_v24  ;;  %v2273_v23 = vld [vmem:[%s3070_s7 + $0x19c] ss:$12 sps:$4 sm:$0xff]   ;;  %v2274_v24 = vld [vmem:[%s3070_s7 + $0x260] ss:$12 sps:$4 sm:$0xff]  }
 0x1f1   :  { %1601 = vmatpush1.bf16.msra.mxu0 %v2211_v25  ;;  %2006 = vmatpush3.bf16.msra.mxu1 %v2245_v26  ;;  %v2271_v26 = vld [vmem:[%s3070_s7 + $0x198] ss:$12 sps:$4 sm:$0xff]  }
 0x1f2   :  { %1602 = vmatprep.subr.bf16.mxu0 %v2216_v27  ;;  %2007 = vmatprep.subr.bf16.mxu1 %v2249_v28  ;;  %v2275_v27 = vld [vmem:[%s3070_s7 + $0x1a0] ss:$12 sps:$4 sm:$0xff]  }
 0x1f3   :  { %v2278_v28 = vld [vmem:[%s3070_s7 + $0x1b4] ss:$12 sps:$4 sm:$0xff]  }
 0x1f5   :  { %1603 = vmatpush1.bf16.msra.mxu0 %v2214_v29  ;;  %2008 = vmatpush3.bf16.msra.mxu1 %v2250_v30  ;;  %v2279_v29 = vld [vmem:[%s3070_s7 + $0x278] ss:$12 sps:$4 sm:$0xff]   ;;  %v2276_v30 = vld [vmem:[%s3070_s7 + $0x1b0] ss:$12 sps:$4 sm:$0xff]  }
 0x1f6   :  { %1604 = vmatprep.subr.bf16.mxu0 %v2219_v31  ;;  %2009 = vmatprep.subr.bf16.mxu1 %v2254_v32  ;;  %v2280_v31 = vld [vmem:[%s3070_s7 + $0x1b8] ss:$12 sps:$4 sm:$0xff]  }
 0x1f7   :  { %v2283_v32 = vld [vmem:[%s3070_s7 + $0x1cc] ss:$12 sps:$4 sm:$0xff]  }
 0x1f9   :  { %1605 = vmatpush1.bf16.msra.mxu0 %v2217_v33  ;;  %2010 = vmatpush3.bf16.msra.mxu1 %v2255_v34  ;;  %v2284_v33 = vld [vmem:[%s3070_s7 + $0x290] ss:$12 sps:$4 sm:$0xff]   ;;  %v2281_v34 = vld [vmem:[%s3070_s7 + $0x1c8] ss:$12 sps:$4 sm:$0xff]  }
 0x1fa   :  { %1606 = vmatprep.subr.bf16.mxu0 %v2222_v35  ;;  %2011 = vmatprep.subr.bf16.mxu1 %v2259_v52  ;;  %v2285_v35 = vld [vmem:[%s3070_s7 + $0x1d0] ss:$12 sps:$4 sm:$0xff]  }
 0x1fb   :  { %v2304_v52 = vld [vmem:[%s3070_s7 + $0x2f0] ss:$12 sps:$4 sm:$0xff]  }
 0x1fd   :  { %1607 = vmatpush1.bf16.msra.mxu0 %v2220_v36  ;;  %2012 = vmatpush3.bf16.msra.mxu1 %v2260_v54  ;;  %v2288_v36 = vld [vmem:[%s3070_s7 + $0x1e4] ss:$12 sps:$4 sm:$0xff]  }
 0x1fe   :  { %1608 = vmatprep.subr.bf16.mxu0 %v2225_v37  ;;  %2013 = vmatprep.subr.bf16.mxu1 %v2264_v56  ;;  %v2289_v37 = vld [vmem:[%s3070_s7 + $0x2a8] ss:$12 sps:$4 sm:$0xff]   ;;  %v2305_v54 = vld [vmem:[%s3070_s7 + $0x230] ss:$12 sps:$4 sm:$0xff]  }
 0x1ff   :  { %v2308_v56 = vld [vmem:[%s3070_s7 + $0x244] ss:$12 sps:$4 sm:$0xff]  }
 0x201   :  { %1609 = vmatpush1.bf16.msra.mxu0 %v2223_v38  ;;  %2014 = vmatpush3.bf16.msra.mxu1 %v2265_v58  ;;  %v2286_v38 = vld [vmem:[%s3070_s7 + $0x1e0] ss:$12 sps:$4 sm:$0xff]  }
 0x202   :  { %1610 = vmatprep.subr.bf16.mxu0 %v2228_v39  ;;  %2021 = vmatprep.subr.bf16.mxu1 %v2269_v60  ;;  %v2290_v39 = vld [vmem:[%s3070_s7 + $0x1e8] ss:$12 sps:$4 sm:$0xff]   ;;  %v2309_v60 = vld [vmem:[%s3070_s7 + $0x258] ss:$12 sps:$4 sm:$0xff]  }
 0x205   :  { %1611 = vmatpush1.bf16.msra.mxu0 %v2226_v40  ;;  %v517_v40 = vsub.s32 2, %v2730_v61 }
 0x206   :  { %1612 = vmatprep.subr.bf16.mxu0 %v2233_v41  ;;  %v2293_v41 = vld [vmem:[%s3070_s7 + $0x1fc] ss:$12 sps:$4 sm:$0xff]  }
 0x209   :  { %1613 = vmatpush1.bf16.msra.mxu0 %v2231_v42  ;;  %v2294_v42 = vld [vmem:[%s3070_s7 + $0x2c0] ss:$12 sps:$4 sm:$0xff]  }
 0x20a   :  { %1614 = vmatprep.subr.bf16.mxu0 %v2238_v43  ;;  %v2291_v43 = vld [vmem:[%s3070_s7 + $0x1f8] ss:$12 sps:$4 sm:$0xff]  }
 0x20d   :  { %1615 = vmatpush1.bf16.msra.mxu0 %v2236_v44  ;;  %v2295_v44 = vld [vmem:[%s3070_s7 + $0x200] ss:$12 sps:$4 sm:$0xff]  }
 0x20e   :  { %1616 = vmatprep.subr.bf16.mxu0 %v2243_v45  ;;  %v518_v45 = vrot.slane %v2890_v63, %v517_v40  ;;  %v2314_v63 = vld [vmem:[%s3070_s7 + $0x274] ss:$12 sps:$4 sm:$0xff]  }
 0x211   :  { %1617 = vmatpush1.bf16.msra.mxu0 %v2241_v46  ;;  %v2298_v46 = vld [vmem:[%s3070_s7 + $0x214] ss:$12 sps:$4 sm:$0xff]  }
 0x212   :  { %1618 = vmatprep.subr.bf16.mxu0 %v2248_v47  ;;  %v2299_v47 = vld [vmem:[%s3070_s7 + $0x2d8] ss:$12 sps:$4 sm:$0xff]  }
 0x215   :  { %1619 = vmatpush1.bf16.msra.mxu0 %v2246_v48  ;;  %v2296_v48 = vld [vmem:[%s3070_s7 + $0x210] ss:$12 sps:$4 sm:$0xff]  }
 0x216   :  { %1620 = vmatprep.subr.bf16.mxu0 %v2253_v49  ;;  %v2300_v49 = vld [vmem:[%s3070_s7 + $0x218] ss:$12 sps:$4 sm:$0xff]  }
 0x219   :  { %1621 = vmatpush1.bf16.msra.mxu0 %v2251_v50 }
 0x21a   :  { %1622 = vmatprep.subr.bf16.mxu0 %v2258_v51  ;;  %v2303_v51 = vld [vmem:[%s3070_s7 + $0x22c] ss:$12 sps:$4 sm:$0xff]  }
 0x21d   :  { %1623 = vmatpush1.bf16.msra.mxu0 %v2256_v53  ;;  %v2301_v53 = vld [vmem:[%s3070_s7 + $0x228] ss:$12 sps:$4 sm:$0xff]  }
 0x21e   :  { %1624 = vmatprep.subr.bf16.mxu0 %v2263_v55 }
 0x221   :  { %1625 = vmatpush1.bf16.msra.mxu0 %v2261_v57  ;;  %v2306_v57 = vld [vmem:[%s3070_s7 + $0x240] ss:$12 sps:$4 sm:$0xff]  }
 0x222   :  { %1635 = vmatprep.subr.bf16.mxu0 %v2268_v59  ;;  %v2311_v59 = vld [vmem:[%s3070_s7 + $0x25c] ss:$12 sps:$4 sm:$0xff]  }
 0x2b7   :  { %v881_v5 = vpop.f32.mrb[0].mxu0  ;;  %v2898_v6 = vpop.f32.mrb[12].mxu1 }
 0x2b8   :  { %v882_v7 = vadd.f32 %v881_v5, %v510_v2  ;;  %v883_v8 = vpop.f32.mrb[1].mxu0  ;;  %v924_v9 = vpop.f32.mrb[13].mxu1  ;;  %v923_v50 = vadd.f32 %v2898_v6, %v518_v45  ;;  %v2317_v2 = vld [vmem:[%s3070_s7 + $0x28c] ss:$12 sps:$4 sm:$0xff]   ;;  %v2323_v6 = vld [vmem:[%s3070_s7 + $0x2bc] ss:$12 sps:$4 sm:$0xff]  }
 0x2b9   :  { %v884_v10 = vadd.f32 %v883_v8, %v514_v3  ;;  %v925_v11 = vadd.f32 %v924_v9, %v522_v4  ;;  %v885_v12 = vpop.f32.mrb[2].mxu0  ;;  %v926_v13 = vpop.f32.mrb[14].mxu1  ;;  %v2315_v3 = vld [vmem:[%s3070_s7 + $0x288] ss:$12 sps:$4 sm:$0xff]   ;;  %v2320_v4 = vld [vmem:[%s3070_s7 + $0x2a4] ss:$12 sps:$4 sm:$0xff]  }
 0x2ba   :  { %v929_v14 = vmax.f32 %v882_v7, 0.0  ;;  %v886_v15 = vpop.f32.mrb[3].mxu0  ;;  %v927_v16 = vpop.f32.mrb[15].mxu1  ;;  %v931_v55 = vmax.f32 %v923_v50, 0.0  ;;  %v2318_v5 = vld [vmem:[%s3070_s7 + $0x2a0] ss:$12 sps:$4 sm:$0xff]  }
 0x2bb   :  { %v930_v17 = vmax.f32 %v884_v10, 0.0  ;;  %v932_v18 = vmax.f32 %v925_v11, 0.0  ;;  %v2321_v7 = vld [vmem:[%s3070_s7 + $0x2b8] ss:$12 sps:$4 sm:$0xff]   ;;  %v2326_v8 = vld [vmem:[%s3070_s7 + $0x2d4] ss:$12 sps:$4 sm:$0xff]  }
 0x2bc   :  { %v933_v22 = vpack.c.bf16 %v929_v14, %v929_v14  ;;  %v935_v58 = vpack.c.bf16 %v931_v55, %v931_v55  ;;  %v2324_v9 = vld [vmem:[%s3070_s7 + $0x2d0] ss:$12 sps:$4 sm:$0xff]   ;;  %v2329_v10 = vld [vmem:[%s3070_s7 + $0x2ec] ss:$12 sps:$4 sm:$0xff]   ;;  %v2327_v11 = vld [vmem:[%s3070_s7 + $0x2e8] ss:$12 sps:$4 sm:$0xff]  }
 0x2bd   :  { %v934_v19 = vpack.c.bf16 %v930_v17, %v930_v17  ;;  %v936_v25 = vpack.c.bf16 %v932_v18, %v932_v18  ;;  %v1065_v17 = vld [vmem:[%s3071_s8] sm:$0x7]  ;;  %s2363_s7 = smov [#allocation2]  }
 0x2be   :  { %v1078_v18 = vrot.slane %v1065_v17, %v517_v40  ;;  %s1768_s8 = sshll.u32 %s2363_s7, 4  ;;  %s1769_s8 = int_to_ptr.vmem [resolvable:$true] %s1768_s8 }
 0x2bf   :  { %1626 = vmatprep.mubr.bf16.mxu0 %v934_v19  ;;  %1708 = vmatprep.mubr.bf16.mxu1 %v934_v19  ;;  %s2336_s28 = scalar_lea.vmem %s1769_s8, 384  ;;  %p2341_p1 = scmp.lt.s32.totalorder %s1769_s8, %s1769_s8 }
 0x2c0   :  { %1627 = vmatmul.mubr.bf16.vlgmr.msra.gmra.mrb[4].mxu0 %v933_v22  ;;  %1709 = vmatmul.mubr.bf16.vlgmr.msra.gmra.mrb[16].mxu1 %v933_v22  ;;  %p2337_p0 = scmp.ne.s32.totalorder %s1769_s8, %s2336_s28  ;;  %p2342_p2 = scmp.lt.s32.totalorder %s2336_s28, %s2336_s28 }
 0x2c1   :  { %1636 = vmatpush1.bf16.msra.mxu0 %v2266_v20  ;;  %2022 = vmatpush3.bf16.msra.mxu1 %v2270_v21 }
 0x2c2   :  { %1667 = vmatprep.mubr.bf16.mxu0 %v936_v25  ;;  %1748 = vmatprep.mubr.bf16.mxu1 %v936_v25  ;;  %p2343_p3 = por %p2342_p2, %p2341_p1 }
 0x2c3   :  { %1637 = vmatprep.subr.bf16.mxu0 %v2273_v23  ;;  %2023 = vmatprep.subr.bf16.mxu1 %v2274_v24 }
 0x2c4   :  { %p2344_p4 = pnand %p2343_p3, %p2337_p0 }
 0x2c5   :  { %1638 = vmatpush1.bf16.msra.mxu0 %v2271_v26  ;;  %2024 = vmatpush3.bf16.msra.mxu1 %v2275_v27  ;;  %v1070_v27 = vrot.slane %v1065_v17, %v2733_v62 }
 0x2c6   :  { %1639 = vmatprep.subr.bf16.mxu0 %v2278_v28  ;;  %2025 = vmatprep.subr.bf16.mxu1 %v2279_v29  ;;  %v1074_v28 = vrot.slane %v1065_v17, %v2739_v0 }
 0x2c9   :  { %1640 = vmatpush1.bf16.msra.mxu0 %v2276_v30  ;;  %2026 = vmatpush3.bf16.msra.mxu1 %v2280_v31 }
 0x2ca   :  { %1641 = vmatprep.subr.bf16.mxu0 %v2283_v32  ;;  %2027 = vmatprep.subr.bf16.mxu1 %v2284_v33 }
 0x2cd   :  { %1642 = vmatpush1.bf16.msra.mxu0 %v2281_v34  ;;  %2028 = vmatpush3.bf16.msra.mxu1 %v2285_v35 }
 0x2ce   :  { %1643 = vmatprep.subr.bf16.mxu0 %v2288_v36  ;;  %2029 = vmatprep.subr.bf16.mxu1 %v2289_v37 }
 0x2d1   :  { %1644 = vmatpush1.bf16.msra.mxu0 %v2286_v38  ;;  %2030 = vmatpush3.bf16.msra.mxu1 %v2290_v39 }
 0x2d2   :  { %1645 = vmatprep.subr.bf16.mxu0 %v2293_v41  ;;  %2031 = vmatprep.subr.bf16.mxu1 %v2294_v42 }
 0x2d5   :  { %1646 = vmatpush1.bf16.msra.mxu0 %v2291_v43  ;;  %2032 = vmatpush3.bf16.msra.mxu1 %v2295_v44 }
 0x2d6   :  { %1647 = vmatprep.subr.bf16.mxu0 %v2298_v46  ;;  %2033 = vmatprep.subr.bf16.mxu1 %v2299_v47 }
 0x2d9   :  { %1648 = vmatpush1.bf16.msra.mxu0 %v2296_v48  ;;  %2034 = vmatpush3.bf16.msra.mxu1 %v2300_v49 }
 0x2da   :  { %1649 = vmatprep.subr.bf16.mxu0 %v2303_v51  ;;  %2035 = vmatprep.subr.bf16.mxu1 %v2304_v52 }
 0x2dd   :  { %1650 = vmatpush1.bf16.msra.mxu0 %v2301_v53  ;;  %2036 = vmatpush3.bf16.msra.mxu1 %v2305_v54 }
 0x2de   :  { %1651 = vmatprep.subr.bf16.mxu0 %v2308_v56 }
 0x2e0   :  { %1749 = vmatmul.mubr.bf16.vlgmr.msra.gmra.mrb[20].mxu1 %v935_v58 }
 0x2e1   :  { %1652 = vmatpush1.bf16.msra.mxu0 %v2306_v57 }
 0x2e2   :  { %1653 = vmatprep.subr.bf16.mxu0 %v2311_v59 }
 0x2e5   :  { %1654 = vmatpush1.bf16.msra.mxu0 %v2309_v60 }
 0x2e6   :  { %1655 = vmatprep.subr.bf16.mxu0 %v2314_v63 }
 0x2e9   :  { %1656 = vmatpush1.bf16.msra.mxu0 %v2312_v1 }
 0x2ea   :  { %1657 = vmatprep.subr.bf16.mxu0 %v2317_v2 }
 0x2ed   :  { %1658 = vmatpush1.bf16.msra.mxu0 %v2315_v3 }
 0x2ee   :  { %1659 = vmatprep.subr.bf16.mxu0 %v2320_v4 }
 0x2f1   :  { %1660 = vmatpush1.bf16.msra.mxu0 %v2318_v5 }
 0x2f2   :  { %1661 = vmatprep.subr.bf16.mxu0 %v2323_v6 }
 0x2f5   :  { %1662 = vmatpush1.bf16.msra.mxu0 %v2321_v7 }
 0x2f6   :  { %1663 = vmatprep.subr.bf16.mxu0 %v2326_v8 }
 0x2f9   :  { %1664 = vmatpush1.bf16.msra.mxu0 %v2324_v9 }
 0x2fa   :  { %1665 = vmatprep.subr.bf16.mxu0 %v2329_v10 }
 0x2fd   :  { %1666 = vmatpush1.bf16.msra.mxu0 %v2327_v11 }
 0x300   :  { %1668 = vmatmul.mubr.bf16.vlgmr.msra.gmra.mrb[4].mxu0 %v935_v58 }
 0x393   :  { %v2015_v12 = vpop.f32.mrb[16].mxu1 }
 0x394   :  { %v2016_v13 = vpop.f32.mrb[17].mxu1 }
 0x395   :  { %v2017_v14 = vadd.f32 %v2016_v13, %v2015_v12  ;;  %v2018_v15 = vpop.f32.mrb[18].mxu1 }
 0x396   :  { %v2019_v16 = vpop.f32.mrb[19].mxu1 }
 0x397   :  { %v1711_v21 = vadd.f32 %v2017_v14, %v1078_v18 }
 0x3b3   :  { %v2037_v19 = vpop.f32.mrb[20].mxu1 }
 0x3b4   :  { %v2038_v20 = vpop.f32.mrb[21].mxu1 }
 0x3b5   :  { %v2039_v22 = vadd.f32 %v2038_v20, %v2037_v19  ;;  %v2040_v23 = vpop.f32.mrb[22].mxu1 }
 0x3b6   :  { %v2041_v24 = vpop.f32.mrb[23].mxu1 }
 0x3b7   :  { %v1751_v25 = vadd.f32 %v2039_v22, %v1711_v21 }
 0x3b9   :  { %2330 = vtanh.f32 %v1751_v25 }
 0x3c3   :  { %v2331_v26 = vpop.eup %2330 }
 0x3c4   :  { %1761 = vst.msk [vmem:[#allocation2 + $0x10] sm:$0xff] %vm198_vm2, %v2331_v26 }
 0x3d3   :  { %v1669_v29 = vpop.f32.mrb[4].mxu0 }
 0x3d4   :  { %v2053_v30 = vadd.f32 %v1669_v29, %v1070_v27  ;;  %v1671_v31 = vpop.f32.mrb[5].mxu0 }
 0x3d5   :  { %v2054_v61 = vadd.f32 %v1671_v31, %v1074_v28  ;;  %v1673_v32 = vpop.f32.mrb[6].mxu0 }
 0x3d6   :  { %2332 = vtanh.f32 %v2053_v30  ;;  %v1674_v33 = vpop.f32.mrb[7].mxu0 }
 0x3d7   :  { %2334 = vtanh.f32 %v2054_v61 }
 0x3e0   :  { %v2333_v34 = vpop.eup %2332 }
 0x3e1   :  { %v2335_v35 = vpop.eup %2334  ;;  %1759 = vst [vmem:[#allocation2] sm:$0xff] %v2333_v34 }
 0x3e2   :  { %1760 = vst [vmem:[#allocation2 + $0x8] sm:$0xff] %v2335_v35 }
 0x3e3   :  { %2347 = shalt.err (!%p2344_p4)
}
 0x3e4   :  { %s2348_s4 = scalar_lea.hbm %s3072_s9, 384 }
 0x3e5   :  { %p2349_p5 = scmp.ne.s32.totalorder %s3072_s9, %s2348_s4  ;;  %p2352_p6 = scmp.lt.u32.totalorder %s2348_s4, %s3072_s9 }
 0x3e7   :  { %p2354_p7 = pnand %p2352_p6, %p2349_p5 }
 0x3e9   :  { %2357 = shalt.err (!%p2354_p7)
}
 0x3ea   :  { %1771 = dma.vmem_to_hbm [thread:$0]  %s1769_s8, 384, %s3072_s9, [#allocation3]  }
 0x3eb   :  { %2358 = dma.done.wait [#allocation3], 384  }
 0x3ec   :  { %2359 = vsyncadd [#allocation3], 4294966912 }
 0x3ed   :  { %1775 = vsyncpa [#allocation3], 1 }

</bundles_post_ra>
